<compile_context>
chip_gen: v5e
topology: v5e:2x2
jax: 0.10.0
libtpu: 0.0.40
codegen_flags: <defaults>
</compile_context>

<pallas_src>
import functools

import jax
import jax.numpy as jnp
from jax.experimental import pallas as pl
from jax.experimental.pallas import tpu as pltpu

_LANES = 128
_MAX_FLAT_TILE_ROWS = 2048      # (2048, 128) f32 tile = 1 MiB  -> ~85% HBM roofline
_TILE_BYTES_2D = 1 << 20        # ~1 MiB row tiles for the 2-D fallback paths


def _bce_with_logits(x, labels):
    # numerically stable:  max(x,0) - x*y + log1p(exp(-|x|))
    return jnp.maximum(x, 0.0) - x * labels + jnp.log1p(jnp.exp(-jnp.abs(x)))


# ---------------------------------------------------------------------------
# kernel bodies
# ---------------------------------------------------------------------------

def _onehot_flat_kernel(x_ref, t_ref, o_ref, *, num_classes, group, tile_rows,
                        inner, n_valid, inv_scale, need_mask):
    """Lane-dense path: logits flattened to (rows, 128); 128//C rows per vreg row."""
    i = pl.program_id(1)

    @pl.when(i == 0)
    def _init():
        o_ref[...] = jnp.zeros_like(o_ref)

    x = x_ref[...].astype(jnp.float32)                 # (tile_rows, 128)
    t = t_ref[...]                                     # (tile_rows, group) int32
    col = jax.lax.broadcasted_iota(jnp.int32, x.shape, 1)

    labels = jnp.zeros(x.shape, jnp.float32)
    for j in range(group):                             # tiny static unroll
        labels = labels + (col == (j * num_classes + t[:, j:j + 1])).astype(jnp.float32)

    loss = _bce_with_logits(x, labels)

    if need_mask:                                      # ragged final tile only
        p = pl.program_id(0)
        row = jax.lax.broadcasted_iota(jnp.int32, x.shape, 0)
        flat = ((p * inner + i) * tile_rows + row) * _LANES + col
        loss = jnp.where(flat < n_valid, loss, 0.0)

    # lane-wise partial sums: no cross-lane reduce in the hot loop
    o_ref[...] += jnp.sum(loss, axis=0, keepdims=True)

    @pl.when(i == inner - 1)
    def _finalize():
        o_ref[...] = o_ref[...] * inv_scale


def _onehot_2d_kernel(x_ref, t_ref, o_ref, *, tile_n, inner, n_rows,
                      inv_scale, need_mask):
    """Fallback for C that does not pack evenly into 128 lanes."""
    i = pl.program_id(1)

    @pl.when(i == 0)
    def _init():
        o_ref[...] = jnp.zeros_like(o_ref)

    x = x_ref[...].astype(jnp.float32)                 # (tile_n, C)
    t = t_ref[...]                                     # (tile_n, 1) int32
    col = jax.lax.broadcasted_iota(jnp.int32, x.shape, 1)
    labels = (col == t).astype(jnp.float32)            # scatter_(1, targets, 1.0)
    loss = _bce_with_logits(x, labels)

    if need_mask:
        p = pl.program_id(0)
        row = ((p * inner + i) * tile_n
               + jax.lax.broadcasted_iota(jnp.int32, x.shape, 0))
        loss = jnp.where(row < n_rows, loss, 0.0)

    lane = jax.lax.broadcasted_iota(jnp.int32, (1, _LANES), 1)
    o_ref[...] += jnp.where(lane == 0, jnp.sum(loss), 0.0)

    @pl.when(i == inner - 1)
    def _finalize():
        o_ref[...] = o_ref[...] * inv_scale


def _dense_kernel(x_ref, y_ref, o_ref, *, tile_n, inner, n_rows,
                  inv_scale, need_mask):
    """Dense (already-built) float label matrix, streamed in its source dtype."""
    i = pl.program_id(1)

    @pl.when(i == 0)
    def _init():
        o_ref[...] = jnp.zeros_like(o_ref)

    x = x_ref[...].astype(jnp.float32)
    y = y_ref[...].astype(jnp.float32)
    loss = _bce_with_logits(x, y)

    if need_mask:
        p = pl.program_id(0)
        row = ((p * inner + i) * tile_n
               + jax.lax.broadcasted_iota(jnp.int32, x.shape, 0))
        loss = jnp.where(row < n_rows, loss, 0.0)

    lane = jax.lax.broadcasted_iota(jnp.int32, (1, _LANES), 1)
    o_ref[...] += jnp.where(lane == 0, jnp.sum(loss), 0.0)

    @pl.when(i == inner - 1)
    def _finalize():
        o_ref[...] = o_ref[...] * inv_scale


# ---------------------------------------------------------------------------
# wrapper
# ---------------------------------------------------------------------------

def _split_tiles(num_tiles):
    # Leading "parallel" axis lets v7x's 2 TensorCores each take half the row
    # tiles; on single-core v5e/v6e it is just a harmless sequential outer loop.
    p = 2 if (num_tiles >= 2 and num_tiles % 2 == 0) else 1
    return p, num_tiles // p


def _compiler_params():
    return pltpu.CompilerParams(
        dimension_semantics=("parallel", "arbitrary"),
        vmem_limit_bytes=32 * 1024 * 1024,   # safe on v5e/v6e/v7x; tiles are ~1-2 MiB
    )


def _row_tile(n, c, bytes_per_elem=4):
    budget_rows = max(8, ((_TILE_BYTES_2D // (c * bytes_per_elem)) // 8) * 8)
    return n if n <= budget_rows else budget_rows


def contrast_loss(inputs, targets, reduction="mean"):
    """Pallas ContrastLoss.forward (module hard-codes ignore_index=None)."""
    assert reduction == "mean", "reference module default is 'mean'"
    n, c = inputs.shape
    inv_scale = 1.0 / float(n * c)

    if targets.ndim == 1:
        t = targets.astype(jnp.int32)
        group = _LANES // c if (c <= _LANES and _LANES % c == 0) else 0
        use_flat = (1 <= group <= 32) and (n % group == 0)

        if use_flat:
            rows = n // group
            x_flat = inputs.reshape(rows, _LANES)       # free row-major view
            t_flat = t.reshape(rows, group)
            tile_rows = rows if rows <= _MAX_FLAT_TILE_ROWS else _MAX_FLAT_TILE_ROWS
            num_tiles = pl.cdiv(rows, tile_rows)
            p, inner = _split_tiles(num_tiles)
            kernel = functools.partial(
                _onehot_flat_kernel, num_classes=c, group=group,
                tile_rows=tile_rows, inner=inner, n_valid=n * c,
                inv_scale=inv_scale, need_mask=(rows % tile_rows) != 0)
            partials = pl.pallas_call(
                kernel,
                out_shape=jax.ShapeDtypeStruct((1, p * _LANES), jnp.float32),
                grid=(p, inner),
                in_specs=[
                    pl.BlockSpec((tile_rows, _LANES),
                                 lambda pi, ii: (pi * inner + ii, 0)),
                    pl.BlockSpec((tile_rows, group),
                                 lambda pi, ii: (pi * inner + ii, 0)),
                ],
                out_specs=pl.BlockSpec((1, _LANES), lambda pi, ii: (0, pi)),
                compiler_params=_compiler_params(),
            )(x_flat, t_flat)
            return jnp.sum(partials)

        # 2-D fallback (C does not fold evenly into 128 lanes)
        t2d = t.reshape(n, 1)
        tile_n = _row_tile(n, c)
        num_tiles = pl.cdiv(n, tile_n)
        p, inner = _split_tiles(num_tiles)
        kernel = functools.partial(
            _onehot_2d_kernel, tile_n=tile_n, inner=inner, n_rows=n,
            inv_scale=inv_scale, need_mask=(n % tile_n) != 0)
        partials = pl.pallas_call(
            kernel,
            out_shape=jax.ShapeDtypeStruct((1, p * _LANES), jnp.float32),
            grid=(p, inner),
            in_specs=[
                pl.BlockSpec((tile_n, c), lambda pi, ii: (pi * inner + ii, 0)),
                pl.BlockSpec((tile_n, 1), lambda pi, ii: (pi * inner + ii, 0)),
            ],
            out_specs=pl.BlockSpec((1, _LANES), lambda pi, ii: (0, pi)),
            compiler_params=_compiler_params(),
        )(inputs, t2d)
        return jnp.sum(partials)

    # Dense float-label path (labels streamed in their source dtype, upcast in-kernel).
    tile_n = _row_tile(n, c)
    num_tiles = pl.cdiv(n, tile_n)
    p, inner = _split_tiles(num_tiles)
    kernel = functools.partial(
        _dense_kernel, tile_n=tile_n, inner=inner, n_rows=n,
        inv_scale=inv_scale, need_mask=(n % tile_n) != 0)
    partials = pl.pallas_call(
        kernel,
        out_shape=jax.ShapeDtypeStruct((1, p * _LANES), jnp.float32),
        grid=(p, inner),
        in_specs=[
            pl.BlockSpec((tile_n, c), lambda pi, ii: (pi * inner + ii, 0)),
            pl.BlockSpec((tile_n, c), lambda pi, ii: (pi * inner + ii, 0)),
        ],
        out_specs=pl.BlockSpec((1, _LANES), lambda pi, ii: (0, pi)),
        compiler_params=_compiler_params(),
    )(inputs, targets)
    return jnp.sum(partials)


# ---------------------------------------------------------------------------
# reference + test
# ---------------------------------------------------------------------------

def _reference(inputs, targets):
    x = inputs.astype(jnp.float32)
    if targets.ndim == 1:
        labels = jax.nn.one_hot(targets, x.shape[1], dtype=jnp.float32)
    else:
        labels = targets.astype(jnp.float32)
    loss = jnp.maximum(x, 0.0) - x * labels + jnp.log1p(jnp.exp(-jnp.abs(x)))
    return jnp.mean(loss)


if __name__ == "__main__":
    key = jax.random.PRNGKey(0)
    k1, k2, k3 = jax.random.split(key, 3)

    N, C = 8, 32
    x_f32 = jax.random.normal(k1, (N, C), dtype=jnp.float32)
    tgt = jax.random.randint(k2, (N,), 0, C, dtype=jnp.int32)

    # 1) f32 logits + integer targets (lane-dense flat path)
    out = jax.block_until_ready(contrast_loss(x_f32, tgt))
    ref = _reference(x_f32, tgt)
    assert jnp.allclose(out, ref, rtol=1e-5, atol=1e-5), (out, ref)

    # 2) bf16 logits + integer targets (bf16 streamed, upcast in-kernel)
    x_bf16 = x_f32.astype(jnp.bfloat16)
    out = jax.block_until_ready(contrast_loss(x_bf16, tgt))
    ref = _reference(x_bf16, tgt)
    assert jnp.allclose(out, ref, rtol=1e-4, atol=1e-4), (out, ref)

    # 3) dense (already one-hot) float labels
    labels = jax.nn.one_hot(tgt, C, dtype=jnp.float32)
    out = jax.block_until_ready(contrast_loss(x_f32, labels))
    ref = _reference(x_f32, labels)
    assert jnp.allclose(out, ref, rtol=1e-5, atol=1e-5), (out, ref)

    # 4) C that does not divide 128 exercises the 2-D fallback path
    C2 = 48
    x2 = jax.random.normal(k3, (N, C2), dtype=jnp.float32)
    t2 = jax.random.randint(k2, (N,), 0, C2, dtype=jnp.int32)
    out = jax.block_until_ready(contrast_loss(x2, t2))
    ref = _reference(x2, t2)
    assert jnp.allclose(out, ref, rtol=1e-5, atol=1e-5), (out, ref)

    print("KERNEL_OK")
</pallas_src>

<mosaic_0001>
module attributes {stable_mosaic.version = 11 : i64} {
  func.func @_onehot_flat_kernel(%arg0: i32, %arg1: i32, %arg2: memref<2x128xf32, #tpu.memory_space<vmem>>, %arg3: memref<2x4xi32, #tpu.memory_space<vmem>>, %arg4: memref<1x128xf32, #tpu.memory_space<vmem>>) attributes {dimension_semantics = [#tpu.dimension_semantics<parallel>, #tpu.dimension_semantics<arbitrary>], iteration_bounds = array<i64: 1, 1>, scalar_prefetch = 0 : i64, scratch_operands = 0 : i64, tpu.core_type = #tpu.core_type<tc>, window_params = [{transform_indices = @transform_0, window_bounds = array<i64: 2, 128>}, {transform_indices = @transform_1, window_bounds = array<i64: 2, 4>}, {transform_indices = @transform_2, window_bounds = array<i64: 1, 128>}]} {
    %c0_i32 = arith.constant 0 : i32
    %0 = arith.cmpi eq, %arg1, %c0_i32 : i32
    %1 = arith.extui %0 : i1 to i32
    %c0_i32_0 = arith.constant 0 : i32
    %2 = arith.cmpi ne, %1, %c0_i32_0 : i32
    scf.if %2 {
      %cst_14 = arith.constant 0.000000e+00 : f32
      %57 = vector.broadcast %cst_14 : f32 to vector<1x128xf32>
      %c0_15 = arith.constant 0 : index
      %c0_16 = arith.constant 0 : index
      %58 = vector.load %arg4[%c0_15, %c0_16] : memref<1x128xf32, #tpu.memory_space<vmem>>, vector<1x128xf32>
      tpu.vector_store %arg4[%c0_15, %c0_16], %57 {strides = array<i32>} : memref<1x128xf32, #tpu.memory_space<vmem>>, vector<1x128xf32>,
    } else {
    }
    %c0 = arith.constant 0 : index
    %c0_1 = arith.constant 0 : index
    %3 = vector.load %arg2[%c0, %c0_1] : memref<2x128xf32, #tpu.memory_space<vmem>>, vector<2x128xf32>
    %c0_2 = arith.constant 0 : index
    %c0_3 = arith.constant 0 : index
    %4 = vector.load %arg3[%c0_2, %c0_3] : memref<2x4xi32, #tpu.memory_space<vmem>>, vector<2x4xi32>
    %5 = tpu.iota {dimensions = array<i32: 1>} : vector<2x128xi32>
    %cst = arith.constant 0.000000e+00 : f32
    %6 = vector.broadcast %cst : f32 to vector<2x128xf32>
    %7 = vector.extract_strided_slice %4 {offsets = [0, 0], sizes = [2, 1], strides = [1, 1]} : vector<2x4xi32> to vector<2x1xi32>
    %c0_i32_4 = arith.constant 0 : i32
    %8 = vector.broadcast %c0_i32_4 : i32 to vector<2x1xi32>
    %9 = arith.addi %8, %7 : vector<2x1xi32>
    %10 = vector.broadcast %9 : vector<2x1xi32> to vector<2x128xi32>
    %11 = arith.cmpi eq, %5, %10 : vector<2x128xi32>
    %12 = arith.extui %11 : vector<2x128xi1> to vector<2x128xi32>
    %13 = arith.sitofp %12 : vector<2x128xi32> to vector<2x128xf32>
    %14 = arith.addf %6, %13 : vector<2x128xf32>
    %15 = vector.extract_strided_slice %4 {offsets = [0, 1], sizes = [2, 1], strides = [1, 1]} : vector<2x4xi32> to vector<2x1xi32>
    %c32_i32 = arith.constant 32 : i32
    %16 = vector.broadcast %c32_i32 : i32 to vector<2x1xi32>
    %17 = arith.addi %16, %15 : vector<2x1xi32>
    %18 = vector.broadcast %17 : vector<2x1xi32> to vector<2x128xi32>
    %19 = arith.cmpi eq, %5, %18 : vector<2x128xi32>
    %20 = arith.extui %19 : vector<2x128xi1> to vector<2x128xi32>
    %21 = arith.sitofp %20 : vector<2x128xi32> to vector<2x128xf32>
    %22 = arith.addf %14, %21 : vector<2x128xf32>
    %23 = vector.extract_strided_slice %4 {offsets = [0, 2], sizes = [2, 1], strides = [1, 1]} : vector<2x4xi32> to vector<2x1xi32>
    %c64_i32 = arith.constant 64 : i32
    %24 = vector.broadcast %c64_i32 : i32 to vector<2x1xi32>
    %25 = arith.addi %24, %23 : vector<2x1xi32>
    %26 = vector.broadcast %25 : vector<2x1xi32> to vector<2x128xi32>
    %27 = arith.cmpi eq, %5, %26 : vector<2x128xi32>
    %28 = arith.extui %27 : vector<2x128xi1> to vector<2x128xi32>
    %29 = arith.sitofp %28 : vector<2x128xi32> to vector<2x128xf32>
    %30 = arith.addf %22, %29 : vector<2x128xf32>
    %31 = vector.extract_strided_slice %4 {offsets = [0, 3], sizes = [2, 1], strides = [1, 1]} : vector<2x4xi32> to vector<2x1xi32>
    %c96_i32 = arith.constant 96 : i32
    %32 = vector.broadcast %c96_i32 : i32 to vector<2x1xi32>
    %33 = arith.addi %32, %31 : vector<2x1xi32>
    %34 = vector.broadcast %33 : vector<2x1xi32> to vector<2x128xi32>
    %35 = arith.cmpi eq, %5, %34 : vector<2x128xi32>
    %36 = arith.extui %35 : vector<2x128xi1> to vector<2x128xi32>
    %37 = arith.sitofp %36 : vector<2x128xi32> to vector<2x128xf32>
    %38 = arith.addf %30, %37 : vector<2x128xf32>
    %cst_5 = arith.constant 0.000000e+00 : f32
    %39 = vector.broadcast %cst_5 : f32 to vector<2x128xf32>
    %40 = arith.maximumf %3, %39 : vector<2x128xf32>
    %41 = arith.mulf %3, %38 : vector<2x128xf32>
    %42 = arith.subf %40, %41 : vector<2x128xf32>
    %43 = math.absf %3 : vector<2x128xf32>
    %cst_6 = arith.constant 0.000000e+00 : f32
    %44 = vector.broadcast %cst_6 : f32 to vector<2x128xf32>
    %45 = arith.subf %44, %43 : vector<2x128xf32>
    %46 = math.exp %45 : vector<2x128xf32>
    %47 = math.log1p %46 : vector<2x128xf32>
    %48 = arith.addf %42, %47 : vector<2x128xf32>
    %c0_7 = arith.constant 0 : index
    %c0_8 = arith.constant 0 : index
    %49 = vector.load %arg4[%c0_7, %c0_8] : memref<1x128xf32, #tpu.memory_space<vmem>>, vector<1x128xf32>
    %cst_9 = arith.constant dense<0.000000e+00> : vector<128xf32>
    %50 = vector.multi_reduction <add>, %48, %cst_9 [0] : vector<2x128xf32> to vector<128xf32>
    %51 = vector.shape_cast %50 : vector<128xf32> to vector<1x128xf32>
    %52 = arith.addf %49, %51 : vector<1x128xf32>
    %c0_10 = arith.constant 0 : index
    %c0_11 = arith.constant 0 : index
    %53 = vector.load %arg4[%c0_10, %c0_11] : memref<1x128xf32, #tpu.memory_space<vmem>>, vector<1x128xf32>
    tpu.vector_store %arg4[%c0_10, %c0_11], %52 {strides = array<i32>} : memref<1x128xf32, #tpu.memory_space<vmem>>, vector<1x128xf32>,
    %c0_i32_12 = arith.constant 0 : i32
    %54 = arith.cmpi eq, %arg1, %c0_i32_12 : i32
    %55 = arith.extui %54 : i1 to i32
    %c0_i32_13 = arith.constant 0 : i32
    %56 = arith.cmpi ne, %55, %c0_i32_13 : i32
    scf.if %56 {
      %c0_14 = arith.constant 0 : index
      %c0_15 = arith.constant 0 : index
      %57 = vector.load %arg4[%c0_14, %c0_15] : memref<1x128xf32, #tpu.memory_space<vmem>>, vector<1x128xf32>
      %cst_16 = arith.constant 3.906250e-03 : f32
      %58 = vector.broadcast %cst_16 : f32 to vector<1x128xf32>
      %59 = arith.mulf %57, %58 : vector<1x128xf32>
      %c0_17 = arith.constant 0 : index
      %c0_18 = arith.constant 0 : index
      %60 = vector.load %arg4[%c0_17, %c0_18] : memref<1x128xf32, #tpu.memory_space<vmem>>, vector<1x128xf32>
      tpu.vector_store %arg4[%c0_17, %c0_18], %59 {strides = array<i32>} : memref<1x128xf32, #tpu.memory_space<vmem>>, vector<1x128xf32>,
    } else {
    }
    return
  }
  func.func @transform_0(%arg0: i32, %arg1: i32) -> (i32, i32) {
    %c1_i32 = arith.constant 1 : i32
    %0 = arith.muli %arg0, %c1_i32 : i32
    %1 = arith.addi %0, %arg1 : i32
    %c0_i32 = arith.constant 0 : i32
    %c0_i32_0 = arith.constant 0 : i32
    return %1, %c0_i32 : i32, i32
  }
  func.func @transform_1(%arg0: i32, %arg1: i32) -> (i32, i32) {
    %c1_i32 = arith.constant 1 : i32
    %0 = arith.muli %arg0, %c1_i32 : i32
    %1 = arith.addi %0, %arg1 : i32
    %c0_i32 = arith.constant 0 : i32
    %c0_i32_0 = arith.constant 0 : i32
    return %1, %c0_i32 : i32, i32
  }
  func.func @transform_2(%arg0: i32, %arg1: i32) -> (i32, i32) {
    %c0_i32 = arith.constant 0 : i32
    %c0_i32_0 = arith.constant 0 : i32
    return %c0_i32, %arg0 : i32, i32
  }
}

</mosaic_0001>

<bundles_post_ra>
// kernel: tpu_custom_call.1
= control target key start
LH: loop header
LB: loop body
LE: loop exit
PB: predicated region body
PF: predicated region fallthrough
CT: control target
= control target key end

     0   :  { %7 = vsyncpa [#allocation3], 0  ;;  %s271_s0 = inlined_call_operand.hbm [shape: f32[2,128], index: 0, kind: input, shape index: {}]   ;;  %s272_s1 = inlined_call_operand.hbm [shape: s32[2,4], index: 1, kind: input, shape index: {}]   ;;  %s273_s2 = inlined_call_operand.hbm [shape: f32[1,128], index: 2, kind: output, shape index: {}]  }
   0x1   :  { %8 = vsyncpa [#allocation6], 0 }
   0x2   :  { %9 = vsyncpa [#allocation4], 0  ;;  %s18_s11 = sshll.u32 %s271_s0, 4  ;;  %s239_s12 = smov [#allocation2]   ;;  %s19_s11 = int_to_ptr.hbm [resolvable:$true] %s18_s11 }
   0x3   :  { %s20_s13 = sshll.u32 %s239_s12, 4  ;;  %s32_s16 = sshll.u32 %s272_s1, 4  ;;  %s21_s13 = int_to_ptr.vmem [resolvable:$true] %s20_s13  ;;  %s33_s16 = int_to_ptr.hbm [resolvable:$true] %s32_s16 }
   0x4   :  { %23 = dma.hbm_to_vmem [thread:$0]  %s19_s11, 32, %s21_s13, [#allocation3]  }
   0x5   :  { %s240_s17 = smov [#allocation5]  }
   0x6   :  { %s34_s18 = sshll.u32 %s240_s17, 4  ;;  %s35_s18 = int_to_ptr.vmem [resolvable:$true] %s34_s18 }
   0x7   :  { %37 = dma.hbm_to_vmem [thread:$0]  %s33_s16, 32, %s35_s18, [#allocation6]  }
   0x8   :  { %233 = dma.done.wait [#allocation3], 32  }
   0x9   :  { %234 = vsyncadd [#allocation3], 4294967264 }
   0xa   :  { %235 = dma.done.wait [#allocation6], 32  }
   0xb   :  { %236 = vsyncadd [#allocation6], 4294967264  ;;  %v241_v0 = vmov 0   ;;  %v242_v1 = vmov 2   ;;  %v243_v2 = vmov 0.0   ;;  %v244_v7 = vmov 1  }
   0xc   :  { %152 = vset.pattern.permute.xlu0 %v241_v0  ;;  %154 = vset.pattern.permute.xlu1 %v242_v1  ;;  %52 = vst [vmem:[#allocation7] sm:$0x1] %v243_v2  ;;  %v54_v3 = vld [vmem:[#allocation5] sm:$0x3]  ;;  %v245_v8 = vmov 3   ;;  %v55_v14 = vlaneseq  ;;  %vm106_vm5 = vcmask 1041408  }
   0xd   :  { %58 = vperm.xlu0 %152, %v54_v3   ;;  %v72_v4 = vadd.s32 64, %v54_v3  ;;  %v64_v5 = vadd.s32 32, %v54_v3  ;;  %v80_v6 = vadd.s32 96, %v54_v3  ;;  %v53_v9 = vld [vmem:[#allocation2] sm:$0x3]  ;;  %s246_s0 = smov [#allocation7]  }
   0xe   :  { %v91_v10 = vand.u32 2147483647, %v53_v9  ;;  %v56_v18 = vand.u32 127, %v55_v14  ;;  %v88_v34 = vmax.f32 %v53_v9, 0.0  ;;  %s127_s1 = sshll.u32 %s246_s0, 4  ;;  %s129_s21 = sshll.u32 %s273_s2, 4  ;;  %s128_s1 = int_to_ptr.vmem [resolvable:$true] %s127_s1  ;;  %s130_s21 = int_to_ptr.hbm [resolvable:$true] %s129_s21 }
   0xf   :  { %74 = vperm.xlu1 %154, %v72_v4  }
  0x10   :  { %v92_v11 = vsub.f32 0.0, %v91_v10 }
  0x12   :  { %v93_v12 = vmul.f32 1.442695, %v92_v11 }
  0x13   :  { %v105_v45 = vld [vmem:[#allocation7] sm:$0x1] }
  0x14   :  { %157 = vpow2.f32 %v93_v12 }
  0x15   :  { %153 = vset.pattern.permute.xlu0 %v244_v7 }
  0x16   :  { %66 = vperm.xlu0 %153, %v64_v5  }
  0x17   :  { %155 = vset.pattern.permute.xlu1 %v245_v8 }
  0x18   :  { %82 = vperm.xlu1 %155, %v80_v6  }
  0x1a   :  { %v158_v13 = vpop.eup %157 }
  0x1b   :  { %v95_v17 = vadd.f32 1.0, %v158_v13  ;;  %v98_v19 = vmul.f32 -0.5, %v158_v13  ;;  %v101_v27 = vand.u32 2147483647, %v158_v13 }
  0x1d   :  { %159 = vlog2.f32 %v95_v17  ;;  %v99_v24 = vadd.f32 1.0, %v98_v19  ;;  %vm102_vm4 = vcmp.lt.f32.partialorder %v101_v27, 0.0004427343 }
  0x1e   :  { %156 = vset.pattern.permute.xlu0 %v245_v8 }
  0x1f   :  { %v100_v32 = vmul.f32 %v158_v13, %v99_v24 }
  0x23   :  { %v160_v25 = vpop.eup %159 }
  0x24   :  { %v97_v31 = vmul.f32 0.6931472, %v160_v25 }
  0x26   :  { %v103_v36 = vsel %vm102_vm4, %v100_v32, %v97_v31 }
  0x7f   :  { %v59_v15 = vpop.permute.xlu0 %58 }
  0x80   :  { %vm60_vm0 = vcmp.eq.s32.totalorder %v56_v18, %v59_v15 }
  0x81   :  { %v75_v16 = vpop.permute.xlu1 %74  ;;  %v140_v21 = vsel %vm60_vm0, 1.0, %v243_v2 }
  0x82   :  { %vm76_vm1 = vcmp.eq.s32.totalorder %v56_v18, %v75_v16 }
  0x83   :  { %v142_v28 = vsel %vm76_vm1, 1.0, %v243_v2 }
  0x88   :  { %v67_v20 = vpop.permute.xlu0 %66 }
  0x89   :  { %vm68_vm2 = vcmp.eq.s32.totalorder %v56_v18, %v67_v20 }
  0x8a   :  { %v141_v22 = vsel %vm68_vm2, 1.0, %v243_v2  ;;  %v83_v23 = vpop.permute.xlu1 %82 }
  0x8b   :  { %v71_v26 = vadd.f32 %v141_v22, %v140_v21  ;;  %vm84_vm3 = vcmp.eq.s32.totalorder %v56_v18, %v83_v23 }
  0x8c   :  { %v143_v29 = vsel %vm84_vm3, 1.0, %v243_v2 }
  0x8d   :  { %v79_v30 = vadd.f32 %v142_v28, %v71_v26 }
  0x8f   :  { %v87_v33 = vadd.f32 %v143_v29, %v79_v30 }
  0x91   :  { %v89_v35 = vmul.f32 %v87_v33, %v53_v9 }
  0x93   :  { %v90_v37 = vsub.f32 %v88_v34, %v89_v35 }
  0x95   :  { %v104_v38 = vadd.f32 %v103_v36, %v90_v37 }
  0x97   :  { %v107_v39 = vsel %vm106_vm5, %v104_v38, 0.0 }
  0x98   :  { %v108_v40 = vrot.slane %v107_v39, 4 }
  0x9a   :  { %v109_v41 = vadd.f32 %v108_v40, %v107_v39 }
  0x9c   :  { %v110_v42 = vrot.slane %v109_v41, 2 }
  0x9e   :  { %v111_v43 = vadd.f32 %v110_v42, %v109_v41 }
  0xa0   :  { %v112_v44 = vrot.slane %v111_v43, 1 }
  0xa2   :  { %v113_v46 = vadd.f32 %v112_v44, %v111_v43 }
  0xa4   :  { %v114_v47 = vadd.f32 %v113_v46, %v105_v45 }
  0xa6   :  { %115 = vst [vmem:[#allocation7] sm:$0x1] %v114_v47 }
  0xad   :  { %v119_v48 = vld [vmem:[#allocation7] sm:$0x1] }
  0xae   :  { %v120_v49 = vmul.f32 0.00390625, %v119_v48 }
  0xb0   :  { %121 = vst [vmem:[#allocation7] sm:$0x1] %v120_v49 }
  0xb1   :  { %132 = dma.vmem_to_hbm [thread:$0]  %s128_s1, 16, %s130_s21, [#allocation4]  }
  0xb2   :  { %237 = dma.done.wait [#allocation4], 16  }
  0xb3   :  { %238 = vsyncadd [#allocation4], 4294967280 }
  0xb4   :  { %137 = vsyncpa [#allocation3], 1 }
  0xb5   :  { %138 = vsyncpa [#allocation6], 1 }
  0xb6   :  { %139 = vsyncpa [#allocation4], 1 }

</bundles_post_ra>
